<compile_context>
chip_gen: v7x
topology: tpu7x:2x2x1
jax: 0.10.0
libtpu: 0.0.40
codegen_flags: <defaults>
</compile_context>

<pallas_src>
import jax
import jax.numpy as jnp
from jax.experimental import pallas as pl
from jax.experimental.pallas import tpu as pltpu


LANE = 128
_VMEM = pl.BlockSpec(memory_space=pltpu.MemorySpace.VMEM)


# ----------------------------------------------------------------------------
# In-kernel math helpers
# ----------------------------------------------------------------------------
def _mish(h):
    # mish(h) = h * tanh(softplus(h)) = h * t / (t + 2),  t = e^h * (e^h + 2).
    # Single exp; approx reciprocal is fine here (not the final sigmoid).
    e = jnp.exp(jnp.minimum(h, 20.0))
    t = e * (e + 2.0)
    return h * t * pl.reciprocal(t + 2.0, approx=True)


def _mish_bn(h, g_ref, beta_ref):
    """Mish -> BatchNorm1d with per-batch (biased) statistics, eps=1e-5."""
    m = _mish(h)
    mean = jnp.mean(m, axis=0, keepdims=True)
    c = m - mean
    var = jnp.mean(c * c, axis=0, keepdims=True)          # biased variance
    return g_ref[...] * (c * jax.lax.rsqrt(var + 1e-5)) + beta_ref[...]


def _dot(a, w_ref):
    # f32 MXU matmul with f32 accumulate.  (bf16 operand cast is the v6e/v7x
    # knob if batch grows; negligible at these shapes.)
    return jnp.dot(a, w_ref[...], preferred_element_type=jnp.float32)


# ----------------------------------------------------------------------------
# Fused forward kernel (entire model in one pallas_call, single grid point)
# ----------------------------------------------------------------------------
def _make_fused_kernel(n_x_layers):
    def kernel(*refs):
        x_ref, labels_ref = refs[0], refs[1]
        out_ref = refs[-1]
        p = refs[2:-1]
        i = 0

        # x_pipeline: [Linear -> Mish -> BatchNorm1d] * n_x_layers
        h = x_ref[...]
        for _ in range(n_x_layers):
            w, b, g, beta = p[i], p[i + 1], p[i + 2], p[i + 3]
            i += 4
            h = _mish_bn(_dot(h, w) + b[...], g, beta)

        # y_linear: Linear -> Mish -> BatchNorm1d
        w, b, g, beta = p[i], p[i + 1], p[i + 2], p[i + 3]
        i += 4
        y = _mish_bn(_dot(labels_ref[...], w) + b[...], g, beta)

        # conditional_pipeline — concat absorbed into a pre-split weight:
        # cat([h, y], 1) @ W  ==  h @ W_top + y @ W_bot
        w_top, w_bot, b, g, beta = p[i], p[i + 1], p[i + 2], p[i + 3], p[i + 4]
        i += 5
        hc = _mish_bn(_dot(h, w_top) + _dot(y, w_bot) + b[...], g, beta)

        # fc + sigmoid.  fc weight is stored as a (1, LANE) row (padded lanes
        # are 0), so the N=1 linear becomes an elementwise-mul + lane-reduce.
        wf, bf = p[i], p[i + 1]
        logit = jnp.sum(hc * wf[...], axis=1, keepdims=True) + bf[...]
        out_ref[...] = 1.0 / (1.0 + jnp.exp(-logit))       # exact divide

    return kernel


@jax.jit
def dcdiscriminator_forward(params, x, labels):
    ops = [x, labels]
    for layer in params["x_pipeline"]:
        ops.extend(layer)
    ops.extend(params["y_linear"])
    ops.extend(params["conditional"])
    ops.extend(params["fc"])

    return pl.pallas_call(
        _make_fused_kernel(len(params["x_pipeline"])),
        out_shape=jax.ShapeDtypeStruct((x.shape[0], 1), jnp.float32),
        in_specs=[_VMEM] * len(ops),
        out_specs=_VMEM,
    )(*ops)


# ----------------------------------------------------------------------------
# Parameter construction (deterministic, synthetic, pre-padded / pre-reshaped)
# ----------------------------------------------------------------------------
def _round_up(n, m=LANE):
    return ((n + m - 1) // m) * m


def _linear_params(key, fan_in, fan_out):
    kw, kb = jax.random.split(key)
    lim = float(fan_in) ** -0.5
    w = jax.random.uniform(kw, (fan_in, fan_out), jnp.float32, -lim, lim)
    b = jax.random.uniform(kb, (fan_out,), jnp.float32, -lim, lim)
    return w, b


def _pad2(a, rows, cols):
    """Zero-pad a 2-D array up to (rows, cols)."""
    out = jnp.zeros((rows, cols), a.dtype)
    return out.at[: a.shape[0], : a.shape[1]].set(a)


def init_dcdiscriminator(key, inp_size, image_bottleneck, n_img_layers, labels_dim):
    # encoder_sizes: inp_size -> ... -> image_bottleneck over n_img_layers steps
    sizes = [inp_size]
    for i in range(1, n_img_layers + 1):
        sizes.append(int(inp_size + (image_bottleneck - inp_size) * i // n_img_layers))

    y_out = max(inp_size // 10, labels_dim + 1)
    cond_hidden = (image_bottleneck + labels_dim) // 2

    keys = jax.random.split(key, n_img_layers + 3)
    params = {"x_pipeline": []}

    # x_pipeline — first layer contracts over the UNPADDED input width; all
    # output widths are padded to a lane multiple.
    in_pad = inp_size
    for i, (ins, outs) in enumerate(zip(sizes[:-1], sizes[1:])):
        w, b = _linear_params(keys[i], ins, outs)
        out_pad = _round_up(outs)
        params["x_pipeline"].append((
            _pad2(w, in_pad, out_pad),                       # weight
            _pad2(b.reshape(1, -1), 1, out_pad),             # bias   (1, N)
            jnp.ones((1, out_pad), jnp.float32),             # gamma  (1, N)
            jnp.zeros((1, out_pad), jnp.float32),            # beta   (1, N)
        ))
        in_pad = out_pad

    # y_linear — contracts over the UNPADDED labels width.
    w, b = _linear_params(keys[-3], labels_dim, y_out)
    y_pad = _round_up(y_out)
    params["y_linear"] = (
        _pad2(w, labels_dim, y_pad),
        _pad2(b.reshape(1, -1), 1, y_pad),
        jnp.ones((1, y_pad), jnp.float32),
        jnp.zeros((1, y_pad), jnp.float32),
    )

    # conditional_pipeline — split the (image_bottleneck + y_out, cond_hidden)
    # weight into the rows consumed by h and the rows consumed by y so the
    # kernel never needs a concat.
    cond_in = image_bottleneck + y_out           # forward-implied concat width
    w, b = _linear_params(keys[-2], cond_in, cond_hidden)
    c_pad = _round_up(cond_hidden)
    params["conditional"] = (
        _pad2(w[:image_bottleneck], in_pad, c_pad),          # W_top (h rows)
        _pad2(w[image_bottleneck:], y_pad, c_pad),           # W_bot (y rows)
        _pad2(b.reshape(1, -1), 1, c_pad),
        jnp.ones((1, c_pad), jnp.float32),
        jnp.zeros((1, c_pad), jnp.float32),
    )

    # fc — stored as a (1, c_pad) row so the kernel does a lane-reduce instead
    # of an N=1 matmul; bias stored as (1, 1).
    w, b = _linear_params(keys[-1], cond_hidden, 1)
    params["fc"] = (_pad2(w.T, 1, c_pad), b.reshape(1, 1))
    return params


if __name__ == "__main__":
    INP_SIZE = 32
    IMAGE_BOTTLENECK = 16
    N_IMG_LAYERS = 2
    LABELS_DIM = 4
    BATCH = 8

    key = jax.random.PRNGKey(0)
    kp, kx, kl = jax.random.split(key, 3)

    params = init_dcdiscriminator(kp, INP_SIZE, IMAGE_BOTTLENECK, N_IMG_LAYERS,
                                  LABELS_DIM)
    x = jax.random.normal(kx, (BATCH, INP_SIZE), jnp.float32)
    labels = jax.random.normal(kl, (BATCH, LABELS_DIM), jnp.float32)

    out = dcdiscriminator_forward(params, x, labels)
    out = jax.block_until_ready(out)

    assert out.shape == (BATCH, 1), out.shape
    assert bool(jnp.all((out >= 0.0) & (out <= 1.0))), "sigmoid range violated"
    print("KERNEL_OK")
</pallas_src>

<mosaic_0001>
module attributes {stable_mosaic.version = 11 : i64} {
  func.func @kernel(%arg0: memref<8x32xf32, #tpu.memory_space<vmem>>, %arg1: memref<8x4xf32, #tpu.memory_space<vmem>>, %arg2: memref<32x128xf32, #tpu.memory_space<vmem>>, %arg3: memref<1x128xf32, #tpu.memory_space<vmem>>, %arg4: memref<1x128xf32, #tpu.memory_space<vmem>>, %arg5: memref<1x128xf32, #tpu.memory_space<vmem>>, %arg6: memref<128x128xf32, #tpu.memory_space<vmem>>, %arg7: memref<1x128xf32, #tpu.memory_space<vmem>>, %arg8: memref<1x128xf32, #tpu.memory_space<vmem>>, %arg9: memref<1x128xf32, #tpu.memory_space<vmem>>, %arg10: memref<4x128xf32, #tpu.memory_space<vmem>>, %arg11: memref<1x128xf32, #tpu.memory_space<vmem>>, %arg12: memref<1x128xf32, #tpu.memory_space<vmem>>, %arg13: memref<1x128xf32, #tpu.memory_space<vmem>>, %arg14: memref<128x128xf32, #tpu.memory_space<vmem>>, %arg15: memref<128x128xf32, #tpu.memory_space<vmem>>, %arg16: memref<1x128xf32, #tpu.memory_space<vmem>>, %arg17: memref<1x128xf32, #tpu.memory_space<vmem>>, %arg18: memref<1x128xf32, #tpu.memory_space<vmem>>, %arg19: memref<1x128xf32, #tpu.memory_space<vmem>>, %arg20: memref<1x1xf32, #tpu.memory_space<vmem>>, %arg21: memref<8x1xf32, #tpu.memory_space<vmem>>) attributes {dimension_semantics = [], scalar_prefetch = 0 : i64, scratch_operands = 0 : i64, tpu.core_type = #tpu.core_type<tc>} {
    %c0 = arith.constant 0 : index
    %c0_0 = arith.constant 0 : index
    %0 = vector.load %arg0[%c0, %c0_0] : memref<8x32xf32, #tpu.memory_space<vmem>>, vector<8x32xf32>
    %c0_1 = arith.constant 0 : index
    %c0_2 = arith.constant 0 : index
    %1 = vector.load %arg2[%c0_1, %c0_2] : memref<32x128xf32, #tpu.memory_space<vmem>>, vector<32x128xf32>
    %cst = arith.constant dense<0.000000e+00> : vector<8x128xf32>
    %2 = tpu.matmul %0, %1, %cst {dimension_numbers = #tpu.dot_dimension_numbers<[1], [0], [0], [1], [0, 0, 1, 1], [], []>} : vector<8x32xf32>, vector<32x128xf32>, vector<8x128xf32> -> vector<8x128xf32>
    %c0_3 = arith.constant 0 : index
    %c0_4 = arith.constant 0 : index
    %3 = vector.load %arg3[%c0_3, %c0_4] : memref<1x128xf32, #tpu.memory_space<vmem>>, vector<1x128xf32>
    %4 = vector.broadcast %3 : vector<1x128xf32> to vector<8x128xf32>
    %5 = arith.addf %2, %4 : vector<8x128xf32>
    %cst_5 = arith.constant 2.000000e+01 : f32
    %6 = vector.broadcast %cst_5 : f32 to vector<8x128xf32>
    %7 = arith.minimumf %5, %6 : vector<8x128xf32>
    %8 = math.exp %7 : vector<8x128xf32>
    %cst_6 = arith.constant 2.000000e+00 : f32
    %9 = vector.broadcast %cst_6 : f32 to vector<8x128xf32>
    %10 = arith.addf %8, %9 : vector<8x128xf32>
    %11 = arith.mulf %8, %10 : vector<8x128xf32>
    %12 = arith.mulf %5, %11 : vector<8x128xf32>
    %cst_7 = arith.constant 2.000000e+00 : f32
    %13 = vector.broadcast %cst_7 : f32 to vector<8x128xf32>
    %14 = arith.addf %11, %13 : vector<8x128xf32>
    %15 = tpu.reciprocal %14 {approx = true} : vector<8x128xf32> -> vector<8x128xf32>
    %16 = arith.mulf %12, %15 : vector<8x128xf32>
    %cst_8 = arith.constant dense<0.000000e+00> : vector<128xf32>
    %17 = vector.multi_reduction <add>, %16, %cst_8 [0] : vector<8x128xf32> to vector<128xf32>
    %18 = vector.shape_cast %17 : vector<128xf32> to vector<1x128xf32>
    %cst_9 = arith.constant 8.000000e+00 : f32
    %19 = vector.broadcast %cst_9 : f32 to vector<1x128xf32>
    %20 = arith.divf %18, %19 : vector<1x128xf32>
    %21 = vector.broadcast %20 : vector<1x128xf32> to vector<8x128xf32>
    %22 = arith.subf %16, %21 : vector<8x128xf32>
    %23 = arith.mulf %22, %22 : vector<8x128xf32>
    %cst_10 = arith.constant dense<0.000000e+00> : vector<128xf32>
    %24 = vector.multi_reduction <add>, %23, %cst_10 [0] : vector<8x128xf32> to vector<128xf32>
    %25 = vector.shape_cast %24 : vector<128xf32> to vector<1x128xf32>
    %cst_11 = arith.constant 8.000000e+00 : f32
    %26 = vector.broadcast %cst_11 : f32 to vector<1x128xf32>
    %27 = arith.divf %25, %26 : vector<1x128xf32>
    %c0_12 = arith.constant 0 : index
    %c0_13 = arith.constant 0 : index
    %28 = vector.load %arg4[%c0_12, %c0_13] : memref<1x128xf32, #tpu.memory_space<vmem>>, vector<1x128xf32>
    %cst_14 = arith.constant 9.99999974E-6 : f32
    %29 = vector.broadcast %cst_14 : f32 to vector<1x128xf32>
    %30 = arith.addf %27, %29 : vector<1x128xf32>
    %31 = math.rsqrt %30 : vector<1x128xf32>
    %32 = vector.broadcast %31 : vector<1x128xf32> to vector<8x128xf32>
    %33 = arith.mulf %22, %32 : vector<8x128xf32>
    %34 = vector.broadcast %28 : vector<1x128xf32> to vector<8x128xf32>
    %35 = arith.mulf %34, %33 : vector<8x128xf32>
    %c0_15 = arith.constant 0 : index
    %c0_16 = arith.constant 0 : index
    %36 = vector.load %arg5[%c0_15, %c0_16] : memref<1x128xf32, #tpu.memory_space<vmem>>, vector<1x128xf32>
    %37 = vector.broadcast %36 : vector<1x128xf32> to vector<8x128xf32>
    %38 = arith.addf %35, %37 : vector<8x128xf32>
    %c0_17 = arith.constant 0 : index
    %c0_18 = arith.constant 0 : index
    %39 = vector.load %arg6[%c0_17, %c0_18] : memref<128x128xf32, #tpu.memory_space<vmem>>, vector<128x128xf32>
    %cst_19 = arith.constant dense<0.000000e+00> : vector<8x128xf32>
    %40 = tpu.matmul %38, %39, %cst_19 {dimension_numbers = #tpu.dot_dimension_numbers<[1], [0], [0], [1], [0, 0, 1, 1], [], []>} : vector<8x128xf32>, vector<128x128xf32>, vector<8x128xf32> -> vector<8x128xf32>
    %c0_20 = arith.constant 0 : index
    %c0_21 = arith.constant 0 : index
    %41 = vector.load %arg7[%c0_20, %c0_21] : memref<1x128xf32, #tpu.memory_space<vmem>>, vector<1x128xf32>
    %42 = vector.broadcast %41 : vector<1x128xf32> to vector<8x128xf32>
    %43 = arith.addf %40, %42 : vector<8x128xf32>
    %cst_22 = arith.constant 2.000000e+01 : f32
    %44 = vector.broadcast %cst_22 : f32 to vector<8x128xf32>
    %45 = arith.minimumf %43, %44 : vector<8x128xf32>
    %46 = math.exp %45 : vector<8x128xf32>
    %cst_23 = arith.constant 2.000000e+00 : f32
    %47 = vector.broadcast %cst_23 : f32 to vector<8x128xf32>
    %48 = arith.addf %46, %47 : vector<8x128xf32>
    %49 = arith.mulf %46, %48 : vector<8x128xf32>
    %50 = arith.mulf %43, %49 : vector<8x128xf32>
    %cst_24 = arith.constant 2.000000e+00 : f32
    %51 = vector.broadcast %cst_24 : f32 to vector<8x128xf32>
    %52 = arith.addf %49, %51 : vector<8x128xf32>
    %53 = tpu.reciprocal %52 {approx = true} : vector<8x128xf32> -> vector<8x128xf32>
    %54 = arith.mulf %50, %53 : vector<8x128xf32>
    %cst_25 = arith.constant dense<0.000000e+00> : vector<128xf32>
    %55 = vector.multi_reduction <add>, %54, %cst_25 [0] : vector<8x128xf32> to vector<128xf32>
    %56 = vector.shape_cast %55 : vector<128xf32> to vector<1x128xf32>
    %cst_26 = arith.constant 8.000000e+00 : f32
    %57 = vector.broadcast %cst_26 : f32 to vector<1x128xf32>
    %58 = arith.divf %56, %57 : vector<1x128xf32>
    %59 = vector.broadcast %58 : vector<1x128xf32> to vector<8x128xf32>
    %60 = arith.subf %54, %59 : vector<8x128xf32>
    %61 = arith.mulf %60, %60 : vector<8x128xf32>
    %cst_27 = arith.constant dense<0.000000e+00> : vector<128xf32>
    %62 = vector.multi_reduction <add>, %61, %cst_27 [0] : vector<8x128xf32> to vector<128xf32>
    %63 = vector.shape_cast %62 : vector<128xf32> to vector<1x128xf32>
    %cst_28 = arith.constant 8.000000e+00 : f32
    %64 = vector.broadcast %cst_28 : f32 to vector<1x128xf32>
    %65 = arith.divf %63, %64 : vector<1x128xf32>
    %c0_29 = arith.constant 0 : index
    %c0_30 = arith.constant 0 : index
    %66 = vector.load %arg8[%c0_29, %c0_30] : memref<1x128xf32, #tpu.memory_space<vmem>>, vector<1x128xf32>
    %cst_31 = arith.constant 9.99999974E-6 : f32
    %67 = vector.broadcast %cst_31 : f32 to vector<1x128xf32>
    %68 = arith.addf %65, %67 : vector<1x128xf32>
    %69 = math.rsqrt %68 : vector<1x128xf32>
    %70 = vector.broadcast %69 : vector<1x128xf32> to vector<8x128xf32>
    %71 = arith.mulf %60, %70 : vector<8x128xf32>
    %72 = vector.broadcast %66 : vector<1x128xf32> to vector<8x128xf32>
    %73 = arith.mulf %72, %71 : vector<8x128xf32>
    %c0_32 = arith.constant 0 : index
    %c0_33 = arith.constant 0 : index
    %74 = vector.load %arg9[%c0_32, %c0_33] : memref<1x128xf32, #tpu.memory_space<vmem>>, vector<1x128xf32>
    %75 = vector.broadcast %74 : vector<1x128xf32> to vector<8x128xf32>
    %76 = arith.addf %73, %75 : vector<8x128xf32>
    %c0_34 = arith.constant 0 : index
    %c0_35 = arith.constant 0 : index
    %77 = vector.load %arg1[%c0_34, %c0_35] : memref<8x4xf32, #tpu.memory_space<vmem>>, vector<8x4xf32>
    %c0_36 = arith.constant 0 : index
    %c0_37 = arith.constant 0 : index
    %78 = vector.load %arg10[%c0_36, %c0_37] : memref<4x128xf32, #tpu.memory_space<vmem>>, vector<4x128xf32>
    %cst_38 = arith.constant dense<0.000000e+00> : vector<8x128xf32>
    %79 = tpu.matmul %77, %78, %cst_38 {dimension_numbers = #tpu.dot_dimension_numbers<[1], [0], [0], [1], [0, 0, 1, 1], [], []>} : vector<8x4xf32>, vector<4x128xf32>, vector<8x128xf32> -> vector<8x128xf32>
    %c0_39 = arith.constant 0 : index
    %c0_40 = arith.constant 0 : index
    %80 = vector.load %arg11[%c0_39, %c0_40] : memref<1x128xf32, #tpu.memory_space<vmem>>, vector<1x128xf32>
    %81 = vector.broadcast %80 : vector<1x128xf32> to vector<8x128xf32>
    %82 = arith.addf %79, %81 : vector<8x128xf32>
    %cst_41 = arith.constant 2.000000e+01 : f32
    %83 = vector.broadcast %cst_41 : f32 to vector<8x128xf32>
    %84 = arith.minimumf %82, %83 : vector<8x128xf32>
    %85 = math.exp %84 : vector<8x128xf32>
    %cst_42 = arith.constant 2.000000e+00 : f32
    %86 = vector.broadcast %cst_42 : f32 to vector<8x128xf32>
    %87 = arith.addf %85, %86 : vector<8x128xf32>
    %88 = arith.mulf %85, %87 : vector<8x128xf32>
    %89 = arith.mulf %82, %88 : vector<8x128xf32>
    %cst_43 = arith.constant 2.000000e+00 : f32
    %90 = vector.broadcast %cst_43 : f32 to vector<8x128xf32>
    %91 = arith.addf %88, %90 : vector<8x128xf32>
    %92 = tpu.reciprocal %91 {approx = true} : vector<8x128xf32> -> vector<8x128xf32>
    %93 = arith.mulf %89, %92 : vector<8x128xf32>
    %cst_44 = arith.constant dense<0.000000e+00> : vector<128xf32>
    %94 = vector.multi_reduction <add>, %93, %cst_44 [0] : vector<8x128xf32> to vector<128xf32>
    %95 = vector.shape_cast %94 : vector<128xf32> to vector<1x128xf32>
    %cst_45 = arith.constant 8.000000e+00 : f32
    %96 = vector.broadcast %cst_45 : f32 to vector<1x128xf32>
    %97 = arith.divf %95, %96 : vector<1x128xf32>
    %98 = vector.broadcast %97 : vector<1x128xf32> to vector<8x128xf32>
    %99 = arith.subf %93, %98 : vector<8x128xf32>
    %100 = arith.mulf %99, %99 : vector<8x128xf32>
    %cst_46 = arith.constant dense<0.000000e+00> : vector<128xf32>
    %101 = vector.multi_reduction <add>, %100, %cst_46 [0] : vector<8x128xf32> to vector<128xf32>
    %102 = vector.shape_cast %101 : vector<128xf32> to vector<1x128xf32>
    %cst_47 = arith.constant 8.000000e+00 : f32
    %103 = vector.broadcast %cst_47 : f32 to vector<1x128xf32>
    %104 = arith.divf %102, %103 : vector<1x128xf32>
    %c0_48 = arith.constant 0 : index
    %c0_49 = arith.constant 0 : index
    %105 = vector.load %arg12[%c0_48, %c0_49] : memref<1x128xf32, #tpu.memory_space<vmem>>, vector<1x128xf32>
    %cst_50 = arith.constant 9.99999974E-6 : f32
    %106 = vector.broadcast %cst_50 : f32 to vector<1x128xf32>
    %107 = arith.addf %104, %106 : vector<1x128xf32>
    %108 = math.rsqrt %107 : vector<1x128xf32>
    %109 = vector.broadcast %108 : vector<1x128xf32> to vector<8x128xf32>
    %110 = arith.mulf %99, %109 : vector<8x128xf32>
    %111 = vector.broadcast %105 : vector<1x128xf32> to vector<8x128xf32>
    %112 = arith.mulf %111, %110 : vector<8x128xf32>
    %c0_51 = arith.constant 0 : index
    %c0_52 = arith.constant 0 : index
    %113 = vector.load %arg13[%c0_51, %c0_52] : memref<1x128xf32, #tpu.memory_space<vmem>>, vector<1x128xf32>
    %114 = vector.broadcast %113 : vector<1x128xf32> to vector<8x128xf32>
    %115 = arith.addf %112, %114 : vector<8x128xf32>
    %c0_53 = arith.constant 0 : index
    %c0_54 = arith.constant 0 : index
    %116 = vector.load %arg14[%c0_53, %c0_54] : memref<128x128xf32, #tpu.memory_space<vmem>>, vector<128x128xf32>
    %cst_55 = arith.constant dense<0.000000e+00> : vector<8x128xf32>
    %117 = tpu.matmul %76, %116, %cst_55 {dimension_numbers = #tpu.dot_dimension_numbers<[1], [0], [0], [1], [0, 0, 1, 1], [], []>} : vector<8x128xf32>, vector<128x128xf32>, vector<8x128xf32> -> vector<8x128xf32>
    %c0_56 = arith.constant 0 : index
    %c0_57 = arith.constant 0 : index
    %118 = vector.load %arg15[%c0_56, %c0_57] : memref<128x128xf32, #tpu.memory_space<vmem>>, vector<128x128xf32>
    %cst_58 = arith.constant dense<0.000000e+00> : vector<8x128xf32>
    %119 = tpu.matmul %115, %118, %cst_58 {dimension_numbers = #tpu.dot_dimension_numbers<[1], [0], [0], [1], [0, 0, 1, 1], [], []>} : vector<8x128xf32>, vector<128x128xf32>, vector<8x128xf32> -> vector<8x128xf32>
    %120 = arith.addf %117, %119 : vector<8x128xf32>
    %c0_59 = arith.constant 0 : index
    %c0_60 = arith.constant 0 : index
    %121 = vector.load %arg16[%c0_59, %c0_60] : memref<1x128xf32, #tpu.memory_space<vmem>>, vector<1x128xf32>
    %122 = vector.broadcast %121 : vector<1x128xf32> to vector<8x128xf32>
    %123 = arith.addf %120, %122 : vector<8x128xf32>
    %cst_61 = arith.constant 2.000000e+01 : f32
    %124 = vector.broadcast %cst_61 : f32 to vector<8x128xf32>
    %125 = arith.minimumf %123, %124 : vector<8x128xf32>
    %126 = math.exp %125 : vector<8x128xf32>
    %cst_62 = arith.constant 2.000000e+00 : f32
    %127 = vector.broadcast %cst_62 : f32 to vector<8x128xf32>
    %128 = arith.addf %126, %127 : vector<8x128xf32>
    %129 = arith.mulf %126, %128 : vector<8x128xf32>
    %130 = arith.mulf %123, %129 : vector<8x128xf32>
    %cst_63 = arith.constant 2.000000e+00 : f32
    %131 = vector.broadcast %cst_63 : f32 to vector<8x128xf32>
    %132 = arith.addf %129, %131 : vector<8x128xf32>
    %133 = tpu.reciprocal %132 {approx = true} : vector<8x128xf32> -> vector<8x128xf32>
    %134 = arith.mulf %130, %133 : vector<8x128xf32>
    %cst_64 = arith.constant dense<0.000000e+00> : vector<128xf32>
    %135 = vector.multi_reduction <add>, %134, %cst_64 [0] : vector<8x128xf32> to vector<128xf32>
    %136 = vector.shape_cast %135 : vector<128xf32> to vector<1x128xf32>
    %cst_65 = arith.constant 8.000000e+00 : f32
    %137 = vector.broadcast %cst_65 : f32 to vector<1x128xf32>
    %138 = arith.divf %136, %137 : vector<1x128xf32>
    %139 = vector.broadcast %138 : vector<1x128xf32> to vector<8x128xf32>
    %140 = arith.subf %134, %139 : vector<8x128xf32>
    %141 = arith.mulf %140, %140 : vector<8x128xf32>
    %cst_66 = arith.constant dense<0.000000e+00> : vector<128xf32>
    %142 = vector.multi_reduction <add>, %141, %cst_66 [0] : vector<8x128xf32> to vector<128xf32>
    %143 = vector.shape_cast %142 : vector<128xf32> to vector<1x128xf32>
    %cst_67 = arith.constant 8.000000e+00 : f32
    %144 = vector.broadcast %cst_67 : f32 to vector<1x128xf32>
    %145 = arith.divf %143, %144 : vector<1x128xf32>
    %c0_68 = arith.constant 0 : index
    %c0_69 = arith.constant 0 : index
    %146 = vector.load %arg17[%c0_68, %c0_69] : memref<1x128xf32, #tpu.memory_space<vmem>>, vector<1x128xf32>
    %cst_70 = arith.constant 9.99999974E-6 : f32
    %147 = vector.broadcast %cst_70 : f32 to vector<1x128xf32>
    %148 = arith.addf %145, %147 : vector<1x128xf32>
    %149 = math.rsqrt %148 : vector<1x128xf32>
    %150 = vector.broadcast %149 : vector<1x128xf32> to vector<8x128xf32>
    %151 = arith.mulf %140, %150 : vector<8x128xf32>
    %152 = vector.broadcast %146 : vector<1x128xf32> to vector<8x128xf32>
    %153 = arith.mulf %152, %151 : vector<8x128xf32>
    %c0_71 = arith.constant 0 : index
    %c0_72 = arith.constant 0 : index
    %154 = vector.load %arg18[%c0_71, %c0_72] : memref<1x128xf32, #tpu.memory_space<vmem>>, vector<1x128xf32>
    %155 = vector.broadcast %154 : vector<1x128xf32> to vector<8x128xf32>
    %156 = arith.addf %153, %155 : vector<8x128xf32>
    %c0_73 = arith.constant 0 : index
    %c0_74 = arith.constant 0 : index
    %157 = vector.load %arg19[%c0_73, %c0_74] : memref<1x128xf32, #tpu.memory_space<vmem>>, vector<1x128xf32>
    %158 = vector.broadcast %157 : vector<1x128xf32> to vector<8x128xf32>
    %159 = arith.mulf %156, %158 : vector<8x128xf32>
    %cst_75 = arith.constant dense<0.000000e+00> : vector<8xf32>
    %160 = vector.multi_reduction <add>, %159, %cst_75 [1] : vector<8x128xf32> to vector<8xf32>
    %161 = vector.shape_cast %160 : vector<8xf32> to vector<8x1xf32>
    %c0_76 = arith.constant 0 : index
    %c0_77 = arith.constant 0 : index
    %162 = vector.load %arg20[%c0_76, %c0_77] : memref<1x1xf32, #tpu.memory_space<vmem>>, vector<1x1xf32>
    %163 = vector.broadcast %162 : vector<1x1xf32> to vector<8x1xf32>
    %164 = arith.addf %161, %163 : vector<8x1xf32>
    %cst_78 = arith.constant 0.000000e+00 : f32
    %165 = vector.broadcast %cst_78 : f32 to vector<8x1xf32>
    %166 = arith.subf %165, %164 : vector<8x1xf32>
    %167 = math.exp %166 : vector<8x1xf32>
    %cst_79 = arith.constant 1.000000e+00 : f32
    %168 = vector.broadcast %cst_79 : f32 to vector<8x1xf32>
    %169 = arith.addf %168, %167 : vector<8x1xf32>
    %cst_80 = arith.constant 1.000000e+00 : f32
    %170 = vector.broadcast %cst_80 : f32 to vector<8x1xf32>
    %171 = arith.divf %170, %169 : vector<8x1xf32>
    %c0_81 = arith.constant 0 : index
    %c0_82 = arith.constant 0 : index
    %172 = vector.load %arg21[%c0_81, %c0_82] : memref<8x1xf32, #tpu.memory_space<vmem>>, vector<8x1xf32>
    tpu.vector_store %arg21[%c0_81, %c0_82], %171 {strides = array<i32>} : memref<8x1xf32, #tpu.memory_space<vmem>>, vector<8x1xf32>,
    return
  }
}

</mosaic_0001>

<bundles_post_ra>
// kernel: dcdiscriminator_forward.1
= control target key start
LH: loop header
LB: loop body
LE: loop exit
PB: predicated region body
PF: predicated region fallthrough
CT: control target
= control target key end

     0   :  { %s1688_s0 = inlined_call_operand.vmem [shape: f32[8,32], index: 0, kind: input, shape index: {}]   ;;  %s1689_s1 = inlined_call_operand.vmem [shape: f32[8,4], index: 1, kind: input, shape index: {}]   ;;  %s1690_s2 = inlined_call_operand.vmem [shape: f32[32,128], index: 2, kind: input, shape index: {}]   ;;  %s1691_s3 = inlined_call_operand.vmem [shape: f32[1,128], index: 3, kind: input, shape index: {}]   ;;  %s1692_s4 = inlined_call_operand.hbm [shape: f32[1,128], index: 4, kind: input, shape index: {}]   ;;  %s1693_s5 = inlined_call_operand.hbm [shape: f32[1,128], index: 5, kind: input, shape index: {}]   ;;  %s1694_s6 = inlined_call_operand.hbm [shape: f32[128,128], index: 6, kind: input, shape index: {}]   ;;  %s1695_s7 = inlined_call_operand.vmem [shape: f32[1,128], index: 7, kind: input, shape index: {}]   ;;  %s1696_s8 = inlined_call_operand.vmem [shape: f32[1,128], index: 8, kind: input, shape index: {}]   ;;  %s1697_s9 = inlined_call_operand.vmem [shape: f32[1,128], index: 9, kind: input, shape index: {}]   ;;  %s1698_s10 = inlined_call_operand.vmem [shape: f32[4,128], index: 10, kind: input, shape index: {}]   ;;  %s1699_s11 = inlined_call_operand.vmem [shape: f32[1,128], index: 11, kind: input, shape index: {}]   ;;  %s1700_s12 = inlined_call_operand.vmem [shape: f32[1,128], index: 12, kind: input, shape index: {}]   ;;  %s1701_s13 = inlined_call_operand.vmem [shape: f32[1,128], index: 13, kind: input, shape index: {}]   ;;  %s1702_s14 = inlined_call_operand.hbm [shape: f32[128,128], index: 14, kind: input, shape index: {}]   ;;  %s1703_s15 = inlined_call_operand.hbm [shape: f32[128,128], index: 15, kind: input, shape index: {}]   ;;  %s1704_s16 = inlined_call_operand.hbm [shape: f32[1,128], index: 16, kind: input, shape index: {}]   ;;  %s1705_s17 = inlined_call_operand.hbm [shape: f32[1,128], index: 17, kind: input, shape index: {}]   ;;  %s1706_s18 = inlined_call_operand.hbm [shape: f32[1,128], index: 18, kind: input, shape index: {}]   ;;  %s1707_s19 = inlined_call_operand.hbm [shape: f32[1,128], index: 19, kind: input, shape index: {}]   ;;  %s1708_s20 = inlined_call_operand.<no memory space> [shape: f32[1,1], index: 20, kind: input, shape index: {}]   ;;  %s1709_s21 = inlined_call_operand.vmem [shape: f32[8,1], index: 21, kind: output, shape index: {}]  }
   0x1   :  { %1713 = sst [smem:[#allocation22_spill]] %s1688_s0  ;;  %v26_v0 = vstv %s1708_s20 }
   0x2   :  { %1714 = sst [smem:[#allocation23_spill]] %s1689_s1  ;;  %27 = vst [vmem:[#allocation2] sm:$0x1] %v26_v0 }
   0x3   :  { %1715 = sst [smem:[#allocation24_spill]] %s1690_s2 }
   0x4   :  { %1716 = sst [smem:[#allocation25_spill]] %s1691_s3 }
   0x5   :  { %1717 = sst [smem:[#allocation26_spill]] %s1692_s4 }
   0x6   :  { %1718 = sst [smem:[#allocation27_spill]] %s1693_s5 }
   0x7   :  { %28 = vsyncpa [#allocation4], 0 }
   0x8   :  { %29 = vsyncpa [#allocation6], 0 }
   0x9   :  { %30 = vsyncpa [#allocation9], 0 }
   0xa   :  { %31 = vsyncpa [#allocation12], 0 }
   0xb   :  { %32 = vsyncpa [#allocation15], 0  ;;  %s1362_s26 = smov [#allocation5]   ;;  %s1719_s29 = sld [smem:[#allocation27_spill]] }
   0xc   :  { %s57_s27 = sshll.u32 %s1362_s26, 4  ;;  %s58_s27 = int_to_ptr.vmem [resolvable:$true] %s57_s27 }
  0x11   :  { %s1154_s0 = scalar_lea.hbm %s1719_s29, 16 }
  0x12   :  { %p1155_p0 = scmp.ne.s32.totalorder %s1719_s29, %s1154_s0  ;;  %p1158_p1 = scmp.lt.u32.totalorder %s1154_s0, %s1719_s29 }
  0x14   :  { %p1160_p2 = pnand %p1158_p1, %p1155_p0 }
  0x16   :  { %1163 = shalt.err (!%p1160_p2)
}
  0x17   :  { %s1164_s20 = scalar_lea.vmem %s58_s27, 16  ;;  %s1168_s23 = scalar_lea.vmem %s58_s27, 32 }
  0x18   :  { %p1165_p3 = scmp.ne.s32.totalorder %s58_s27, %s1164_s20  ;;  %p1169_p4 = scmp.lt.s32.totalorder %s58_s27, %s58_s27 }
  0x19   :  { %p1170_p5 = scmp.lt.s32.totalorder %s1168_s23, %s1164_s20 }
  0x1b   :  { %p1171_p6 = por %p1170_p5, %p1169_p4 }
  0x1d   :  { %p1172_p7 = pnand %p1171_p6, %p1165_p3 }
  0x1f   :  { %1175 = shalt.err (!%p1172_p7)
}
  0x20   :  { %60 = dma.hbm_to_vmem [thread:$0]  %s1719_s29, 16, %s58_s27, [#allocation6]  }
  0x21   :  { %s1363_s2 = smov [#allocation8]   ;;  %s1364_s26 = smov [#allocation11]  }
  0x22   :  { %s92_s25 = sshll.u32 %s1363_s2, 4  ;;  %s117_s3 = sshll.u32 %s1364_s26, 4  ;;  %s93_s25 = int_to_ptr.vmem [resolvable:$true] %s92_s25  ;;  %s118_s3 = int_to_ptr.vmem [resolvable:$true] %s117_s3 }
  0x23   :  { %s1176_s4 = scalar_lea.hbm %s1702_s14, 2048 }
  0x24   :  { %p1177_p8 = scmp.ne.s32.totalorder %s1702_s14, %s1176_s4  ;;  %p1180_p9 = scmp.lt.u32.totalorder %s1176_s4, %s1702_s14 }
  0x26   :  { %p1182_p10 = pnand %p1180_p9, %p1177_p8 }
  0x28   :  { %1185 = shalt.err (!%p1182_p10)
}
  0x29   :  { %s1186_s27 = scalar_lea.vmem %s93_s25, 2048  ;;  %p1191_p12 = scmp.lt.s32.totalorder %s93_s25, %s93_s25 }
  0x2a   :  { %p1187_p11 = scmp.ne.s32.totalorder %s93_s25, %s1186_s27  ;;  %p1192_p13 = scmp.lt.s32.totalorder %s1186_s27, %s1186_s27 }
  0x2c   :  { %p1193_p0 = por %p1192_p13, %p1191_p12 }
  0x2e   :  { %p1194_p1 = pnand %p1193_p0, %p1187_p11 }
  0x30   :  { %1197 = shalt.err (!%p1194_p1)
}
  0x31   :  { %s1365_s29 = smov 128   ;;  %s1366_s23 = smov 8  }
  0x32   :  { %98 = dma.hbm_to_vmem [thread:$0]  %s1702_s14, 2048, %s93_s25, [#allocation9], %s1365_s29, %s1365_s29, %s1366_s23  }
  0x33   :  { %s1198_s28 = scalar_lea.hbm %s1704_s16, 16 }
  0x34   :  { %p1199_p2 = scmp.ne.s32.totalorder %s1704_s16, %s1198_s28  ;;  %p1202_p3 = scmp.lt.u32.totalorder %s1198_s28, %s1704_s16 }
  0x36   :  { %p1204_p4 = pnand %p1202_p3, %p1199_p2 }
  0x38   :  { %1207 = shalt.err (!%p1204_p4)
}
  0x39   :  { %s1208_s22 = scalar_lea.vmem %s118_s3, 16  ;;  %s1212_s20 = scalar_lea.vmem %s118_s3, 32 }
  0x3a   :  { %p1209_p5 = scmp.ne.s32.totalorder %s118_s3, %s1208_s22  ;;  %p1213_p6 = scmp.lt.s32.totalorder %s118_s3, %s118_s3 }
  0x3b   :  { %p1214_p7 = scmp.lt.s32.totalorder %s1212_s20, %s1208_s22 }
  0x3d   :  { %p1215_p8 = por %p1214_p7, %p1213_p6 }
  0x3f   :  { %p1216_p9 = pnand %p1215_p8, %p1209_p5 }
  0x41   :  { %1219 = shalt.err (!%p1216_p9)
}
  0x42   :  { %120 = dma.hbm_to_vmem [thread:$0]  %s1704_s16, 16, %s118_s3, [#allocation12]  }
  0x43   :  { %s1367_s27 = smov [#allocation14]   ;;  %s1368_s24 = smov [#allocation3]  }
  0x44   :  { %s137_s1 = sshll.u32 %s1367_s27, 4  ;;  %s47_s2 = sshll.u32 %s1368_s24, 4  ;;  %s138_s1 = int_to_ptr.vmem [resolvable:$true] %s137_s1  ;;  %s48_s2 = int_to_ptr.vmem [resolvable:$true] %s47_s2 }
  0x45   :  { %s1220_s0 = scalar_lea.hbm %s1706_s18, 16 }
  0x46   :  { %p1221_p10 = scmp.ne.s32.totalorder %s1706_s18, %s1220_s0  ;;  %p1224_p11 = scmp.lt.u32.totalorder %s1220_s0, %s1706_s18 }
  0x48   :  { %p1226_p12 = pnand %p1224_p11, %p1221_p10 }
  0x4a   :  { %1229 = shalt.err (!%p1226_p12)
}
  0x4b   :  { %s1230_s16 = scalar_lea.vmem %s138_s1, 16  ;;  %s1234_s3 = scalar_lea.vmem %s138_s1, 32 }
  0x4c   :  { %p1231_p13 = scmp.ne.s32.totalorder %s138_s1, %s1230_s16  ;;  %p1235_p0 = scmp.lt.s32.totalorder %s138_s1, %s138_s1 }
  0x4d   :  { %p1236_p1 = scmp.lt.s32.totalorder %s1234_s3, %s1230_s16 }
  0x4f   :  { %p1237_p2 = por %p1236_p1, %p1235_p0 }
  0x51   :  { %p1238_p3 = pnand %p1237_p2, %p1231_p13 }
  0x53   :  { %1241 = shalt.err (!%p1238_p3)
}
  0x54   :  { %140 = dma.hbm_to_vmem [thread:$0]  %s1706_s18, 16, %s138_s1, [#allocation15]  }
  0x55   :  { %s1720_s24 = sld [smem:[#allocation26_spill]] }
  0x5b   :  { %s1242_s26 = scalar_lea.hbm %s1720_s24, 16 }
  0x5c   :  { %p1243_p4 = scmp.ne.s32.totalorder %s1720_s24, %s1242_s26  ;;  %p1246_p5 = scmp.lt.u32.totalorder %s1242_s26, %s1720_s24 }
  0x5e   :  { %p1248_p6 = pnand %p1246_p5, %p1243_p4 }
  0x60   :  { %1251 = shalt.err (!%p1248_p6)
}
  0x61   :  { %s1252_s5 = scalar_lea.vmem %s48_s2, 16  ;;  %s1256_s22 = scalar_lea.vmem %s48_s2, 32 }
  0x62   :  { %p1253_p7 = scmp.ne.s32.totalorder %s48_s2, %s1252_s5  ;;  %p1257_p8 = scmp.lt.s32.totalorder %s48_s2, %s48_s2 }
  0x63   :  { %p1258_p9 = scmp.lt.s32.totalorder %s1256_s22, %s1252_s5 }
  0x65   :  { %p1259_p10 = por %p1258_p9, %p1257_p8 }
  0x67   :  { %p1260_p11 = pnand %p1259_p10, %p1253_p7 }
  0x69   :  { %1263 = shalt.err (!%p1260_p11)
}
  0x6a   :  { %50 = dma.hbm_to_vmem [thread:$0]  %s1720_s24, 16, %s48_s2, [#allocation4]  }
  0x6b   :  { %s1369_s16 = smov [#allocation7]   ;;  %s1370_s20 = smov [#allocation10]  }
  0x6c   :  { %s66_s3 = sshll.u32 %s1369_s16, 4  ;;  %s104_s14 = sshll.u32 %s1370_s20, 4  ;;  %s67_s3 = int_to_ptr.vmem [resolvable:$true] %s66_s3  ;;  %s105_s14 = int_to_ptr.vmem [resolvable:$true] %s104_s14 }
  0x6d   :  { %s1264_s26 = scalar_lea.hbm %s1694_s6, 2048 }
  0x6e   :  { %p1265_p12 = scmp.ne.s32.totalorder %s1694_s6, %s1264_s26  ;;  %p1268_p13 = scmp.lt.u32.totalorder %s1264_s26, %s1694_s6 }
  0x70   :  { %p1270_p0 = pnand %p1268_p13, %p1265_p12 }
  0x72   :  { %1273 = shalt.err (!%p1270_p0)
}
  0x73   :  { %s1274_s2 = scalar_lea.vmem %s67_s3, 2048  ;;  %p1279_p2 = scmp.lt.s32.totalorder %s67_s3, %s67_s3 }
  0x74   :  { %p1275_p1 = scmp.ne.s32.totalorder %s67_s3, %s1274_s2  ;;  %p1280_p3 = scmp.lt.s32.totalorder %s1274_s2, %s1274_s2 }
  0x76   :  { %p1281_p4 = por %p1280_p3, %p1279_p2 }
  0x78   :  { %p1282_p5 = pnand %p1281_p4, %p1275_p1 }
  0x7a   :  { %1285 = shalt.err (!%p1282_p5)
}
  0x7b   :  { %72 = dma.hbm_to_vmem [thread:$0]  %s1694_s6, 2048, %s67_s3, [#allocation6], %s1365_s29, %s1365_s29, %s1366_s23  }
  0x7c   :  { %s1286_s1 = scalar_lea.hbm %s1703_s15, 2048 }
  0x7d   :  { %p1287_p6 = scmp.ne.s32.totalorder %s1703_s15, %s1286_s1  ;;  %p1290_p7 = scmp.lt.u32.totalorder %s1286_s1, %s1703_s15 }
  0x7f   :  { %p1292_p8 = pnand %p1290_p7, %p1287_p6 }
  0x81   :  { %1295 = shalt.err (!%p1292_p8)
}
  0x82   :  { %s1296_s26 = scalar_lea.vmem %s105_s14, 2048  ;;  %p1301_p10 = scmp.lt.s32.totalorder %s105_s14, %s105_s14 }
  0x83   :  { %p1297_p9 = scmp.ne.s32.totalorder %s105_s14, %s1296_s26  ;;  %p1302_p11 = scmp.lt.s32.totalorder %s1296_s26, %s1296_s26 }
  0x85   :  { %p1303_p12 = por %p1302_p11, %p1301_p10 }
  0x87   :  { %p1304_p13 = pnand %p1303_p12, %p1297_p9 }
  0x89   :  { %1307 = shalt.err (!%p1304_p13)
}
  0x8a   :  { %110 = dma.hbm_to_vmem [thread:$0]  %s1703_s15, 2048, %s105_s14, [#allocation9], %s1365_s29, %s1365_s29, %s1366_s23  }
  0x8b   :  { %s1371_s28 = smov [#allocation13]   ;;  %s1372_s4 = smov [#allocation16]  }
  0x8c   :  { %s127_s0 = sshll.u32 %s1371_s28, 4  ;;  %s147_s30 = sshll.u32 %s1372_s4, 4  ;;  %s128_s0 = int_to_ptr.vmem [resolvable:$true] %s127_s0  ;;  %s148_s30 = int_to_ptr.vmem [resolvable:$true] %s147_s30 }
  0x8d   :  { %s1308_s5 = scalar_lea.hbm %s1705_s17, 16 }
  0x8e   :  { %p1309_p0 = scmp.ne.s32.totalorder %s1705_s17, %s1308_s5  ;;  %p1312_p1 = scmp.lt.u32.totalorder %s1308_s5, %s1705_s17 }
  0x90   :  { %p1314_p2 = pnand %p1312_p1, %p1309_p0 }
  0x92   :  { %1317 = shalt.err (!%p1314_p2)
}
  0x93   :  { %s1318_s15 = scalar_lea.vmem %s128_s0, 16  ;;  %s1322_s29 = scalar_lea.vmem %s128_s0, 32 }
  0x94   :  { %p1319_p3 = scmp.ne.s32.totalorder %s128_s0, %s1318_s15  ;;  %p1323_p4 = scmp.lt.s32.totalorder %s128_s0, %s128_s0 }
  0x95   :  { %p1324_p5 = scmp.lt.s32.totalorder %s1322_s29, %s1318_s15 }
  0x97   :  { %p1325_p6 = por %p1324_p5, %p1323_p4 }
  0x99   :  { %p1326_p7 = pnand %p1325_p6, %p1319_p3 }
  0x9b   :  { %1329 = shalt.err (!%p1326_p7)
}
  0x9c   :  { %130 = dma.hbm_to_vmem [thread:$0]  %s1705_s17, 16, %s128_s0, [#allocation12]  }
  0x9d   :  { %s1330_s27 = scalar_lea.hbm %s1707_s19, 16 }
  0x9e   :  { %p1331_p8 = scmp.ne.s32.totalorder %s1707_s19, %s1330_s27  ;;  %p1334_p9 = scmp.lt.u32.totalorder %s1330_s27, %s1707_s19 }
  0xa0   :  { %p1336_p10 = pnand %p1334_p9, %p1331_p8 }
  0xa2   :  { %1339 = shalt.err (!%p1336_p10)
}
  0xa3   :  { %s1340_s4 = scalar_lea.vmem %s148_s30, 16  ;;  %s1344_s2 = scalar_lea.vmem %s148_s30, 32 }
  0xa4   :  { %p1341_p11 = scmp.ne.s32.totalorder %s148_s30, %s1340_s4  ;;  %p1345_p12 = scmp.lt.s32.totalorder %s148_s30, %s148_s30 }
  0xa5   :  { %p1346_p13 = scmp.lt.s32.totalorder %s1344_s2, %s1340_s4 }
  0xa7   :  { %p1347_p0 = por %p1346_p13, %p1345_p12 }
  0xa9   :  { %p1348_p1 = pnand %p1347_p0, %p1341_p11 }
  0xab   :  { %1351 = shalt.err (!%p1348_p1)
}
  0xac   :  { %150 = dma.hbm_to_vmem [thread:$0]  %s1707_s19, 16, %s148_s30, [#allocation15]  }
  0xad   :  { %1352 = dma.done.wait [#allocation4], 16  }
  0xae   :  { %1353 = vsyncadd [#allocation4], 4294967280 }
  0xaf   :  { %1354 = dma.done.wait [#allocation6], 2064  }
  0xb0   :  { %1355 = vsyncadd [#allocation6], 4294965232 }
  0xb1   :  { %1356 = dma.done.wait [#allocation9], 4096  }
  0xb2   :  { %1357 = vsyncadd [#allocation9], 4294963200 }
  0xb3   :  { %1358 = dma.done.wait [#allocation12], 32  }
  0xb4   :  { %1359 = vsyncadd [#allocation12], 4294967264 }
  0xb5   :  { %1360 = dma.done.wait [#allocation15], 32  }
  0xb6   :  { %1361 = vsyncadd [#allocation15], 4294967264  ;;  %v1373_v1 = vmov 0.0|0.0   ;;  %vm1374_vm0 = vmmov 0   ;;  %v1375_v2 = vmov 0.0   ;;  %s1721_s24 = sld [smem:[#allocation24_spill]] }
  0xb7   :  { %1034 = vmatprep.subr.bf16.mxu0 %v1373_v1  ;;  %921 = vmatprep.mubr.msk.f32.mxu0 %vm1374_vm0, %v1375_v2  ;;  %s1722_s14 = sld [smem:[#allocation22_spill]]  ;;  %vm192_vm1 = vcmask 261120   ;;  %v449_v10 = vld [vmem:[%s1698_s10] sm:$0xf]  ;;  %vm461_vm2 = vcmask 1043456   ;;  %s1723_s6 = sld [smem:[#allocation23_spill]] }
  0xb8   :  { %1040 = vmatprep.subr.bf16.mxu1 %v1373_v1  ;;  %956 = vmatprep.mubr.msk.f32.mxu1 %vm1374_vm0, %v1375_v2  ;;  %vm457_vm3 = vcmask 31744   ;;  %v311_v12 = vld [vmem:[#allocation7] sm:$0xff]  ;;  %v312_v13 = vld [vmem:[#allocation7 + $0x8] sm:$0xff]  ;;  %v313_v15 = vld [vmem:[#allocation7 + $0x10] sm:$0xff]  ;;  %s1724_s28 = sld [smem:[#allocation25_spill]]  ;;  %vm827_vm4 = vcmask 7168  }
  0xb9   :  { %v1041_v14 = vpack.c.bf16 %v312_v13, %v311_v12  ;;  %v314_v16 = vld [vmem:[#allocation7 + $0x18] sm:$0xff]  ;;  %v315_v18 = vld [vmem:[#allocation7 + $0x20] sm:$0xff]  ;;  %v316_v19 = vld [vmem:[#allocation7 + $0x28] sm:$0xff] }
  0xba   :  { %v1044_v17 = vpack.c.bf16 %v314_v16, %v313_v15  ;;  %v1047_v20 = vpack.c.bf16 %v316_v19, %v315_v18  ;;  %v317_v21 = vld [vmem:[#allocation7 + $0x30] sm:$0xff]  ;;  %v318_v22 = vld [vmem:[#allocation7 + $0x38] sm:$0xff]  ;;  %v319_v24 = vld [vmem:[#allocation7 + $0x40] sm:$0xff] }
  0xbb   :  { %1042 = vmatpush3.bf16.msra.mxu1 %v1041_v14  ;;  %v1050_v23 = vpack.c.bf16 %v318_v22, %v317_v21  ;;  %v320_v25 = vld [vmem:[#allocation7 + $0x48] sm:$0xff]  ;;  %v321_v27 = vld [vmem:[#allocation7 + $0x50] sm:$0xff]  ;;  %v322_v28 = vld [vmem:[#allocation7 + $0x58] sm:$0xff] }
  0xbc   :  { %v181_v3 = vld [vmem:[%s1721_s24] sm:$0xff]  ;;  %v182_v4 = vld [vmem:[%s1721_s24 + $0x8] sm:$0xff]  ;;  %v183_v5 = vld [vmem:[%s1721_s24 + $0x10] sm:$0xff]  ;;  %1043 = vmatprep.subr.bf16.mxu1 %v1373_v1  ;;  %v1053_v26 = vpack.c.bf16 %v320_v25, %v319_v24  ;;  %v1056_v29 = vpack.c.bf16 %v322_v28, %v321_v27 }
  0xbd   :  { %v1035_v6 = vpack.c.bf16 %v182_v4, %v181_v3  ;;  %v184_v7 = vld [vmem:[%s1721_s24 + $0x18] sm:$0xff]  ;;  %v180_v9 = vld [vmem:[%s1722_s14] sm:$0xff]  ;;  %v324_v31 = vld [vmem:[#allocation7 + $0x68] sm:$0xff] }
  0xbe   :  { %v1038_v8 = vpack.c.bf16 %v184_v7, %v183_v5  ;;  %v448_v11 = vld [vmem:[%s1723_s6] sm:$0xff]  ;;  %v325_v33 = vld [vmem:[#allocation7 + $0x70] sm:$0xff]  ;;  %v596_v58 = vld [vmem:[#allocation10 + $0x8] sm:$0xff] }
  0xbf   :  { %1036 = vmatpush3.bf16.msra.mxu0 %v1035_v6  ;;  %1045 = vmatpush3.bf16.msra.mxu1 %v1044_v17  ;;  %v323_v30 = vld [vmem:[#allocation7 + $0x60] sm:$0xff]  ;;  %v326_v34 = vld [vmem:[#allocation7 + $0x78] sm:$0xff]  ;;  %v597_v59 = vld [vmem:[#allocation10 + $0x10] sm:$0xff] }
  0xc0   :  { %1037 = vmatprep.subr.bf16.mxu0 %v1373_v1  ;;  %1046 = vmatprep.subr.bf16.mxu1 %v1373_v1  ;;  %v1059_v32 = vpack.c.bf16 %v324_v31, %v323_v30  ;;  %v1062_v35 = vpack.c.bf16 %v326_v34, %v325_v33  ;;  %v838_v36 = vld [vmem:[%s1724_s28] ss:$0 sm:$0xff]  ;;  %v595_v57 = vld [vmem:[#allocation10] sm:$0xff]  ;;  %v600_v4 = vld [vmem:[#allocation10 + $0x28] sm:$0xff] }
  0xc1   :  { %v1065_v60 = vpack.c.bf16 %v596_v58, %v595_v57  ;;  %v598_v61 = vld [vmem:[#allocation10 + $0x18] sm:$0xff]  ;;  %v599_v3 = vld [vmem:[#allocation10 + $0x20] sm:$0xff]  ;;  %v604_v14 = vld [vmem:[#allocation10 + $0x48] sm:$0xff] }
  0xc2   :  { %v1068_v63 = vpack.c.bf16 %v598_v61, %v597_v59  ;;  %v1071_v6 = vpack.c.bf16 %v600_v4, %v599_v3  ;;  %v603_v13 = vld [vmem:[#allocation10 + $0x40] sm:$0xff]  ;;  %v841_v22 = vld [vmem:[#allocation5] ss:$0 sm:$0xff]  ;;  %v845_v25 = vld [vmem:[%s1699_s11] ss:$0 sm:$0xff] }
  0xc3   :  { %1039 = vmatpush3.bf16.msra.mxu0 %v1038_v8  ;;  %1048 = vmatpush3.bf16.msra.mxu1 %v1047_v20  ;;  %v601_v8 = vld [vmem:[#allocation10 + $0x30] sm:$0xff]  ;;  %v1077_v16 = vpack.c.bf16 %v604_v14, %v603_v13  ;;  %v840_v20 = vld [vmem:[#allocation3] ss:$0 sm:$0xff]  ;;  %v607_v57 = vld [vmem:[#allocation10 + $0x60] sm:$0xff] }
  0xc4   :  { %959 = vmatprep.subr.mxu0 %v1375_v2  ;;  %1049 = vmatprep.subr.bf16.mxu1 %v1373_v1  ;;  %v608_v58 = vld [vmem:[#allocation10 + $0x68] sm:$0xff]  ;;  %v848_v3 = vld [vmem:[%s1700_s12] ss:$0 sm:$0xff]  ;;  %v583_v13 = vld [vmem:[#allocation8 + $0x20] sm:$0xff] }
  0xc5   :  { %v1083_v59 = vpack.c.bf16 %v608_v58, %v607_v57  ;;  %v584_v14 = vld [vmem:[#allocation8 + $0x28] sm:$0xff] }
  0xc6   :  { %922 = vmatmul.mubr.msk.f32.vlgmr.msra.gmra.mrb[0].mxu0 %vm192_vm1, %v180_v9  ;;  %v602_v9 = vld [vmem:[#allocation10 + $0x38] sm:$0xff] }
  0xc7   :  { %961 = vmatprep.mubr.msk.f32.mxu0 %vm1374_vm0, %v1375_v2  ;;  %960 = vmatpush3.msk.msra.mxu0 %vm461_vm2, %v449_v10 }
  0xc8   :  { %1064 = vmatprep.subr.bf16.mxu0 %v1373_v1  ;;  %1051 = vmatpush3.bf16.msra.mxu1 %v1050_v23 }
  0xc9   :  { %1052 = vmatprep.subr.bf16.mxu1 %v1373_v1 }
  0xca   :  { %962 = vmatmul.mubr.msk.f32.vlgmr.msra.gmra.mrb[2].mxu0 %vm457_vm3, %v448_v11  ;;  %v1074_v11 = vpack.c.bf16 %v602_v9, %v601_v8  ;;  %v580_v8 = vld [vmem:[#allocation8 + $0x8] sm:$0xff] }
  0xcb   :  { %996 = vmatprep.mubr.msk.f32.mxu0 %vm1374_vm0, %v1375_v2  ;;  %1066 = vmatpush3.bf16.msra.mxu0 %v1065_v60 }
  0xcc   :  { %1054 = vmatpush3.bf16.msra.mxu1 %v1053_v26  ;;  %1067 = vmatprep.subr.bf16.mxu0 %v1373_v1 }
  0xcd   :  { %1055 = vmatprep.subr.bf16.mxu1 %v1373_v1 }
  0xcf   :  { %1069 = vmatpush3.bf16.msra.mxu0 %v1068_v63  ;;  %v610_v63 = vld [vmem:[#allocation10 + $0x78] sm:$0xff] }
  0xd0   :  { %1057 = vmatpush3.bf16.msra.mxu1 %v1056_v29  ;;  %1070 = vmatprep.subr.bf16.mxu0 %v1373_v1 }
  0xd1   :  { %1058 = vmatprep.subr.bf16.mxu1 %v1373_v1 }
  0xd3   :  { %1072 = vmatpush3.bf16.msra.mxu0 %v1071_v6 }
  0xd4   :  { %1060 = vmatpush3.bf16.msra.mxu1 %v1059_v32  ;;  %1073 = vmatprep.subr.bf16.mxu0 %v1373_v1 }
  0xd5   :  { %1061 = vmatprep.subr.bf16.mxu1 %v1373_v1 }
  0xd7   :  { %1075 = vmatpush3.bf16.msra.mxu0 %v1074_v11  ;;  %v582_v11 = vld [vmem:[#allocation8 + $0x18] sm:$0xff] }
  0xd8   :  { %1063 = vmatpush3.bf16.msra.mxu1 %v1062_v35  ;;  %1076 = vmatprep.subr.bf16.mxu0 %v1373_v1 }
  0xd9   :  { %1088 = vmatprep.subr.bf16.mxu1 %v1373_v1 }
  0xdb   :  { %1078 = vmatpush3.bf16.msra.mxu0 %v1077_v16  ;;  %v585_v16 = vld [vmem:[#allocation8 + $0x30] sm:$0xff] }
  0xdc   :  { %1079 = vmatprep.subr.bf16.mxu0 %v1373_v1 }
 0x199   :  { %v262_v37 = vpop.f32.mrb[0].mxu0 }
 0x19a   :  { %v263_v38 = vadd.f32 %v838_v36, %v262_v37  ;;  %v923_v39 = vpop.f32.mrb[1].mxu0 }
 0x19c   :  { %v266_v40 = vmin.f32 %v263_v38, 20.0 }
 0x19d   :  { %v531_v26 = vpop.f32.mrb[2].mxu0 }
 0x19e   :  { %v267_v41 = vmul.f32 1.442695, %v266_v40  ;;  %v532_v27 = vadd.f32 %v845_v25, %v531_v26  ;;  %v963_v28 = vpop.f32.mrb[3].mxu0  ;;  %v591_v25 = vld [vmem:[#allocation8 + $0x60] sm:$0xff]  ;;  %v592_v26 = vld [vmem:[#allocation8 + $0x68] sm:$0xff] }
 0x19f   :  { %v593_v28 = vld [vmem:[#allocation8 + $0x70] sm:$0xff] }
 0x1a0   :  { %1126 = vpow2.f32 %v267_v41  ;;  %v535_v29 = vmin.f32 %v532_v27, 20.0 }
 0x1a2   :  { %v536_v30 = vmul.f32 1.442695, %v535_v29  ;;  %v594_v29 = vld [vmem:[#allocation8 + $0x78] sm:$0xff] }
 0x1aa   :  { %v1127_v42 = vpop.eup %1126 }
 0x1ab   :  { %v269_v43 = vadd.f32 2.0, %v1127_v42 }
 0x1ad   :  { %v270_v44 = vmul.f32 %v1127_v42, %v269_v43 }
 0x1af   :  { %v272_v45 = vadd.f32 2.0, %v270_v44  ;;  %v271_v46 = vmul.f32 %v270_v44, %v263_v38 }
 0x1b1   :  { %1128 = vrcp.f32 %v272_v45 }
 0x1bb   :  { %v1129_v47 = vpop.eup %1128 }
 0x1bc   :  { %v274_v48 = vmul.f32 %v1129_v47, %v271_v46 }
 0x1be   :  { %v275_v49 = vrot.slane %v274_v48, 4 }
 0x1c0   :  { %v276_v50 = vadd.f32 %v275_v49, %v274_v48 }
 0x1c2   :  { %v277_v51 = vrot.slane %v276_v50, 2 }
 0x1c4   :  { %v278_v52 = vadd.f32 %v277_v51, %v276_v50 }
 0x1c6   :  { %v279_v53 = vrot.slane %v278_v52, 1 }
 0x1c8   :  { %v280_v54 = vadd.f32 %v279_v53, %v278_v52 }
 0x1ca   :  { %v282_v55 = vmul.f32 0.125, %v280_v54  ;;  %v605_v54 = vld [vmem:[#allocation10 + $0x50] sm:$0xff] }
 0x1cc   :  { %v283_v56 = vsub.f32 %v274_v48, %v282_v55  ;;  %v606_v55 = vld [vmem:[#allocation10 + $0x58] sm:$0xff] }
 0x1ce   :  { %v284_v62 = vmul.f32 %v283_v56, %v283_v56 }
 0x1d0   :  { %v285_v0 = vrot.slane %v284_v62, 4 }
 0x1d2   :  { %v286_v5 = vadd.f32 %v285_v0, %v284_v62  ;;  %v609_v62 = vld [vmem:[#allocation10 + $0x70] sm:$0xff] }
 0x1d3   :  { %v1086_v0 = vpack.c.bf16 %v610_v63, %v609_v62  ;;  %v844_v62 = vld [vmem:[%s1697_s9] ss:$0 sm:$0xff] }
 0x1d4   :  { %v287_v7 = vrot.slane %v286_v5, 2 }
 0x1d6   :  { %v288_v10 = vadd.f32 %v287_v7, %v286_v5  ;;  %v849_v5 = vld [vmem:[%s1701_s13] ss:$0 sm:$0xff]  ;;  %v579_v7 = vld [vmem:[#allocation8] sm:$0xff] }
 0x1d7   :  { %v1089_v9 = vpack.c.bf16 %v580_v8, %v579_v7 }
 0x1d8   :  { %v289_v12 = vrot.slane %v288_v10, 1 }
 0x1da   :  { %v290_v15 = vadd.f32 %v289_v12, %v288_v10  ;;  %v581_v10 = vld [vmem:[#allocation8 + $0x10] sm:$0xff] }
 0x1db   :  { %v1092_v12 = vpack.c.bf16 %v582_v11, %v581_v10 }
 0x1dc   :  { %v291_v17 = vmul.f32 0.125, %v290_v15  ;;  %v1095_v15 = vpack.c.bf16 %v584_v14, %v583_v13 }
 0x1de   :  { %v293_v18 = vadd.f32 1e-05, %v291_v17  ;;  %v586_v17 = vld [vmem:[#allocation8 + $0x38] sm:$0xff] }
 0x1e0   :  { %1130 = vrsqrt.f32 %v293_v18  ;;  %v1098_v18 = vpack.c.bf16 %v586_v17, %v585_v16 }
 0x1e1   :  { %1132 = vpow2.f32 %v536_v30  ;;  %v1110_v30 = vpack.c.bf16 %v594_v29, %v593_v28 }
 0x1ea   :  { %v1131_v19 = vpop.eup %1130 }
 0x1eb   :  { %v295_v21 = vmul.f32 %v1131_v19, %v283_v56  ;;  %v1133_v31 = vpop.eup %1132  ;;  %v1080_v56 = vpack.c.bf16 %v606_v55, %v605_v54  ;;  %v587_v19 = vld [vmem:[#allocation8 + $0x40] sm:$0xff] }
 0x1ec   :  { %v538_v32 = vadd.f32 2.0, %v1133_v31 }
 0x1ed   :  { %v302_v23 = vmul.f32 %v840_v20, %v295_v21  ;;  %1081 = vmatpush3.bf16.msra.mxu0 %v1080_v56  ;;  %v588_v20 = vld [vmem:[#allocation8 + $0x48] sm:$0xff] }
 0x1ee   :  { %v539_v33 = vmul.f32 %v1133_v31, %v538_v32  ;;  %1082 = vmatprep.subr.bf16.mxu0 %v1373_v1  ;;  %v1101_v21 = vpack.c.bf16 %v588_v20, %v587_v19  ;;  %v842_v31 = vld [vmem:[%s1695_s7] ss:$0 sm:$0xff] }
 0x1ef   :  { %v310_v24 = vadd.f32 %v841_v22, %v302_v23  ;;  %v589_v22 = vld [vmem:[#allocation8 + $0x50] sm:$0xff]  ;;  %v590_v23 = vld [vmem:[#allocation8 + $0x58] sm:$0xff] }
 0x1f0   :  { %v541_v34 = vadd.f32 2.0, %v539_v33  ;;  %v540_v35 = vmul.f32 %v539_v33, %v532_v27  ;;  %v1107_v27 = vpack.c.bf16 %v592_v26, %v591_v25 }
 0x1f1   :  { %957 = vmatmul.mubr.f32.vlgmr.msra.gmra.mrb[0].mxu1 %v310_v24  ;;  %1084 = vmatpush3.bf16.msra.mxu0 %v1083_v59  ;;  %v1104_v24 = vpack.c.bf16 %v590_v23, %v589_v22 }
 0x1f2   :  { %1031 = vmatprep.mubr.msk.f32.mxu1 %vm1374_vm0, %v1375_v2  ;;  %1134 = vrcp.f32 %v541_v34  ;;  %1085 = vmatprep.subr.bf16.mxu0 %v1373_v1 }
 0x1f3   :  { %1090 = vmatpush3.bf16.msra.mxu1 %v1089_v9 }
 0x1f4   :  { %1091 = vmatprep.subr.bf16.mxu1 %v1373_v1 }
 0x1f5   :  { %1087 = vmatpush3.bf16.msra.mxu0 %v1086_v0 }
 0x1f7   :  { %1093 = vmatpush3.bf16.msra.mxu1 %v1092_v12 }
 0x1f8   :  { %1094 = vmatprep.subr.bf16.mxu1 %v1373_v1 }
 0x1fb   :  { %1096 = vmatpush3.bf16.msra.mxu1 %v1095_v15 }
 0x1fc   :  { %v1135_v36 = vpop.eup %1134  ;;  %1097 = vmatprep.subr.bf16.mxu1 %v1373_v1 }
 0x1fd   :  { %v543_v37 = vmul.f32 %v1135_v36, %v540_v35 }
 0x1ff   :  { %v544_v38 = vrot.slane %v543_v37, 4  ;;  %1099 = vmatpush3.bf16.msra.mxu1 %v1098_v18 }
 0x200   :  { %1100 = vmatprep.subr.bf16.mxu1 %v1373_v1 }
 0x201   :  { %v545_v2 = vadd.f32 %v544_v38, %v543_v37 }
 0x203   :  { %v546_v39 = vrot.slane %v545_v2, 2  ;;  %1102 = vmatpush3.bf16.msra.mxu1 %v1101_v21 }
 0x204   :  { %1103 = vmatprep.subr.bf16.mxu1 %v1373_v1 }
 0x205   :  { %v547_v40 = vadd.f32 %v546_v39, %v545_v2 }
 0x207   :  { %v548_v41 = vrot.slane %v547_v40, 1  ;;  %1105 = vmatpush3.bf16.msra.mxu1 %v1104_v24 }
 0x208   :  { %1106 = vmatprep.subr.bf16.mxu1 %v1373_v1 }
 0x209   :  { %v549_v42 = vadd.f32 %v548_v41, %v547_v40 }
 0x20b   :  { %v550_v43 = vmul.f32 0.125, %v549_v42  ;;  %1108 = vmatpush3.bf16.msra.mxu1 %v1107_v27 }
 0x20c   :  { %1109 = vmatprep.subr.bf16.mxu1 %v1373_v1 }
 0x20d   :  { %v551_v44 = vsub.f32 %v543_v37, %v550_v43 }
 0x20f   :  { %v552_v45 = vmul.f32 %v551_v44, %v551_v44  ;;  %1111 = vmatpush3.bf16.msra.mxu1 %v1110_v30 }
 0x211   :  { %v553_v46 = vrot.slane %v552_v45, 4 }
 0x213   :  { %v554_v47 = vadd.f32 %v553_v46, %v552_v45 }
 0x215   :  { %v555_v48 = vrot.slane %v554_v47, 2 }
 0x217   :  { %v556_v49 = vadd.f32 %v555_v48, %v554_v47 }
 0x219   :  { %v557_v50 = vrot.slane %v556_v49, 1 }
 0x21b   :  { %v558_v51 = vadd.f32 %v557_v50, %v556_v49 }
 0x21d   :  { %v559_v52 = vmul.f32 0.125, %v558_v51 }
 0x21f   :  { %v561_v53 = vadd.f32 1e-05, %v559_v52 }
 0x221   :  { %1136 = vrsqrt.f32 %v561_v53 }
 0x22b   :  { %v1137_v60 = vpop.eup %1136 }
 0x22c   :  { %v563_v61 = vmul.f32 %v1137_v60, %v551_v44  ;;  %v843_v60 = vld [vmem:[%s1696_s8] ss:$0 sm:$0xff] }
 0x22e   :  { %v570_v4 = vmul.f32 %v848_v3, %v563_v61 }
 0x230   :  { %v578_v6 = vadd.f32 %v849_v5, %v570_v4 }
 0x232   :  { %997 = vmatmul.mubr.f32.vlgmr.msra.gmra.mrb[4].mxu0 %v578_v6  ;;  %v850_v6 = vld [vmem:[#allocation11] ss:$0 sm:$0xff] }
 0x2c4   :  { %v400_v32 = vpop.f32.mrb[0].mxu1 }
 0x2c5   :  { %v401_v33 = vadd.f32 %v842_v31, %v400_v32  ;;  %v958_v34 = vpop.f32.mrb[1].mxu1 }
 0x2c7   :  { %v404_v35 = vmin.f32 %v401_v33, 20.0 }
 0x2c9   :  { %v405_v36 = vmul.f32 1.442695, %v404_v35 }
 0x2cb   :  { %1138 = vpow2.f32 %v405_v36 }
 0x2d5   :  { %v1139_v37 = vpop.eup %1138 }
 0x2d6   :  { %v407_v38 = vadd.f32 2.0, %v1139_v37 }
 0x2d8   :  { %v408_v2 = vmul.f32 %v1139_v37, %v407_v38  ;;  %v851_v37 = vld [vmem:[#allocation13] ss:$0 sm:$0xff] }
 0x2da   :  { %v410_v39 = vadd.f32 2.0, %v408_v2  ;;  %v409_v1 = vmul.f32 %v408_v2, %v401_v33  ;;  %v852_v2 = vld [vmem:[#allocation14] ss:$0 sm:$0xff] }
 0x2dc   :  { %1140 = vrcp.f32 %v410_v39 }
 0x2e6   :  { %v1141_v40 = vpop.eup %1140 }
 0x2e7   :  { %v412_v41 = vmul.f32 %v1141_v40, %v409_v1  ;;  %v853_v1 = vld [vmem:[#allocation16] ss:$0 sm:$0xff] }
 0x2e9   :  { %v413_v42 = vrot.slane %v412_v41, 4 }
 0x2eb   :  { %v414_v43 = vadd.f32 %v413_v42, %v412_v41  ;;  %v854_v42 = vld [vmem:[#allocation2] ss:$0 sm:$0xff] }
 0x2ed   :  { %v415_v44 = vrot.slane %v414_v43, 2 }
 0x2ef   :  { %v416_v45 = vadd.f32 %v415_v44, %v414_v43 }
 0x2f1   :  { %v417_v46 = vrot.slane %v416_v45, 1 }
 0x2f3   :  { %v418_v47 = vadd.f32 %v417_v46, %v416_v45 }
 0x2f5   :  { %v419_v48 = vmul.f32 0.125, %v418_v47 }
 0x2f7   :  { %v420_v49 = vsub.f32 %v412_v41, %v419_v48 }
 0x2f9   :  { %v421_v50 = vmul.f32 %v420_v49, %v420_v49 }
 0x2fb   :  { %v422_v51 = vrot.slane %v421_v50, 4 }
 0x2fd   :  { %v423_v52 = vadd.f32 %v422_v51, %v421_v50 }
 0x2ff   :  { %v424_v53 = vrot.slane %v423_v52, 2 }
 0x301   :  { %v425_v54 = vadd.f32 %v424_v53, %v423_v52 }
 0x303   :  { %v426_v55 = vrot.slane %v425_v54, 1 }
 0x305   :  { %v427_v56 = vadd.f32 %v426_v55, %v425_v54  ;;  %v677_v3 = vpop.f32.mrb[4].mxu0 }
 0x306   :  { %v998_v4 = vpop.f32.mrb[5].mxu0 }
 0x307   :  { %v428_v57 = vmul.f32 0.125, %v427_v56 }
 0x309   :  { %v430_v58 = vadd.f32 1e-05, %v428_v57 }
 0x30b   :  { %1142 = vrsqrt.f32 %v430_v58 }
 0x315   :  { %v1143_v59 = vpop.eup %1142 }
 0x316   :  { %v432_v61 = vmul.f32 %v1143_v59, %v420_v49 }
 0x318   :  { %v439_v63 = vmul.f32 %v843_v60, %v432_v61 }
 0x31a   :  { %v447_v0 = vadd.f32 %v844_v62, %v439_v63 }
 0x31c   :  { %1032 = vmatmul.mubr.f32.vlgmr.msra.gmra.mrb[2].mxu1 %v447_v0 }
 0x3ef   :  { %v747_v5 = vpop.f32.mrb[2].mxu1 }
 0x3f0   :  { %v748_v7 = vadd.f32 %v747_v5, %v677_v3  ;;  %v1033_v8 = vpop.f32.mrb[3].mxu1 }
 0x3f2   :  { %v758_v9 = vadd.f32 %v850_v6, %v748_v7 }
 0x3f4   :  { %v759_v10 = vmin.f32 %v758_v9, 20.0 }
 0x3f6   :  { %v760_v11 = vmul.f32 1.442695, %v759_v10 }
 0x3f8   :  { %1144 = vpow2.f32 %v760_v11 }
 0x402   :  { %v1145_v12 = vpop.eup %1144 }
 0x403   :  { %v762_v13 = vadd.f32 2.0, %v1145_v12 }
 0x405   :  { %v763_v14 = vmul.f32 %v1145_v12, %v762_v13 }
 0x407   :  { %v765_v15 = vadd.f32 2.0, %v763_v14  ;;  %v764_v16 = vmul.f32 %v763_v14, %v758_v9 }
 0x409   :  { %1146 = vrcp.f32 %v765_v15 }
 0x413   :  { %v1147_v17 = vpop.eup %1146 }
 0x414   :  { %v767_v18 = vmul.f32 %v1147_v17, %v764_v16 }
 0x416   :  { %v768_v19 = vrot.slane %v767_v18, 4 }
 0x418   :  { %v769_v20 = vadd.f32 %v768_v19, %v767_v18 }
 0x41a   :  { %v770_v21 = vrot.slane %v769_v20, 2 }
 0x41c   :  { %v771_v22 = vadd.f32 %v770_v21, %v769_v20 }
 0x41e   :  { %v772_v23 = vrot.slane %v771_v22, 1 }
 0x420   :  { %v773_v24 = vadd.f32 %v772_v23, %v771_v22 }
 0x422   :  { %v774_v25 = vmul.f32 0.125, %v773_v24 }
 0x424   :  { %v775_v26 = vsub.f32 %v767_v18, %v774_v25 }
 0x426   :  { %v776_v27 = vmul.f32 %v775_v26, %v775_v26 }
 0x428   :  { %v777_v28 = vrot.slane %v776_v27, 4 }
 0x42a   :  { %v778_v29 = vadd.f32 %v777_v28, %v776_v27 }
 0x42c   :  { %v779_v30 = vrot.slane %v778_v29, 2 }
 0x42e   :  { %v780_v31 = vadd.f32 %v779_v30, %v778_v29 }
 0x430   :  { %v781_v32 = vrot.slane %v780_v31, 1 }
 0x432   :  { %v782_v33 = vadd.f32 %v781_v32, %v780_v31 }
 0x434   :  { %v783_v34 = vmul.f32 0.125, %v782_v33 }
 0x436   :  { %v785_v35 = vadd.f32 1e-05, %v783_v34 }
 0x438   :  { %1148 = vrsqrt.f32 %v785_v35 }
 0x442   :  { %v1149_v36 = vpop.eup %1148 }
 0x443   :  { %v787_v38 = vmul.f32 %v1149_v36, %v775_v26 }
 0x445   :  { %v794_v39 = vmul.f32 %v851_v37, %v787_v38 }
 0x447   :  { %v802_v40 = vadd.f32 %v852_v2, %v794_v39 }
 0x449   :  { %v810_v41 = vmul.f32 %v853_v1, %v802_v40 }
 0x44b   :  { %811 = vadd.xlane.f32.xlu0 %v810_v41 }
 0x4d8   :  { %v812_v43 = vpop.xlane.xlu0 %811 }
 0x4d9   :  { %v820_v44 = vadd.f32 %v854_v42, %v812_v43 }
 0x4db   :  { %v821_v45 = vsub.f32 0.0, %v820_v44 }
 0x4dd   :  { %v822_v46 = vmul.f32 1.442695, %v821_v45 }
 0x4df   :  { %1150 = vpow2.f32 %v822_v46 }
 0x4e9   :  { %v1151_v47 = vpop.eup %1150 }
 0x4ea   :  { %v824_v48 = vadd.f32 1.0, %v1151_v47 }
 0x4ec   :  { %1152 = vrcp.f32 %v824_v48 }
 0x4f6   :  { %v1153_v49 = vpop.eup %1152 }
 0x4f7   :  { %828 = vst.msk [vmem:[%s1709_s21] sm:$0xff] %vm827_vm4, %v1153_v49 }
 0x4f8   :  { %833 = vsyncpa [#allocation4], 1 }
 0x4f9   :  { %834 = vsyncpa [#allocation6], 1 }
 0x4fa   :  { %835 = vsyncpa [#allocation9], 1 }
 0x4fb   :  { %836 = vsyncpa [#allocation12], 1 }
 0x4fc   :  { %837 = vsyncpa [#allocation15], 1 }

</bundles_post_ra>
